<compile_context>
chip_gen: v7x
topology: tpu7x:2x2x1
jax: 0.10.0
libtpu: 0.0.40
codegen_flags: <defaults>
</compile_context>

<pallas_src>
import functools

import jax
import jax.numpy as jnp
from jax.experimental import pallas as pl
from jax.experimental.pallas import tpu as pltpu


def _mean_filter_kernel(x_ref, o_ref, mid_ref, *, k: int, p: int, H: int, W: int):
    """One grid step: one image x one channel tile, NCHW layout.

    x_ref  : (1, CB, H, W)         input block (W on lanes, H on sublanes)
    o_ref  : (1, CB, H, W)         output block
    mid_ref: (CB, H, W + 2p) f32   vertical sums, zero-padded along W only
    """
    CB = x_ref.shape[1]
    Wp = W + 2 * p
    inv = 1.0 / float(k * k)

    # Zero only the thin W halo columns (the interior columns are fully
    # overwritten below).  Redone every step: scratch persists across steps.
    if p > 0:
        zcol = jnp.zeros((CB, H, p), jnp.float32)
        mid_ref[:, :, 0:p] = zcol
        mid_ref[:, :, W + p:Wp] = zcol

    # ---- Pass 1: vertical (H) k-tap sums, written into mid[:, h, p:p+W]. ----
    # Interior rows h in [p, H-p): all k taps valid; taps are shifted sublane
    # slices read straight from the input ref (no padded copy of the tile).
    Hin = H - 2 * p
    if Hin > 0:
        acc = x_ref[0, :, 0:Hin, :].astype(jnp.float32)
        for di in range(1, k):
            acc = acc + x_ref[0, :, di:di + Hin, :].astype(jnp.float32)
        mid_ref[:, p:p + Hin, p:p + W] = acc

    # Boundary rows: truncated vertical sums (zero padding => just fewer taps).
    # These are static per-row slices; only 2p rows total.
    for h in range(min(p, H)):                       # top rows
        hi = min(H, h + p + 1)
        acc = x_ref[0, :, 0:1, :].astype(jnp.float32)
        for di in range(1, hi):
            acc = acc + x_ref[0, :, di:di + 1, :].astype(jnp.float32)
        mid_ref[:, h:h + 1, p:p + W] = acc
    for h in range(max(H - p, p), H):                # bottom rows
        lo = h - p
        acc = x_ref[0, :, lo:lo + 1, :].astype(jnp.float32)
        for di in range(lo + 1, H):
            acc = acc + x_ref[0, :, di:di + 1, :].astype(jnp.float32)
        mid_ref[:, h:h + 1, p:p + W] = acc

    # ---- Pass 2: horizontal (W) k-tap sums: lane-shifted ref reads from the
    # W-padded scratch, one full-width (lane-dense) store to the output. ----
    # NOTE: for very large k (> ~5) a running-sum (sliding window) would keep
    # the VPU adds O(1)/pixel; for typical box-filter sizes taps are cheaper.
    out = mid_ref[:, :, 0:W]
    for dj in range(1, k):
        out = out + mid_ref[:, :, dj:dj + W]
    o_ref[0] = (out * inv).astype(o_ref.dtype)


def _pick_channel_tile(N: int, C: int, per_channel_bytes: int,
                       block_budget: int) -> int:
    """Largest divisor of C whose block fits the budget; ensure >=2 grid steps
    (for v7x megacore) whenever the shape allows it."""
    cb_max = max(1, block_budget // max(1, per_channel_bytes))
    cb = 1
    for d in range(1, C + 1):
        if C % d == 0 and d <= cb_max:
            cb = d
    if N * (C // cb) < 2 and C > 1:
        for d in range(C // 2, 0, -1):
            if C % d == 0:
                cb = min(cb, d)
                break
    return cb


def mean_filter(x: jax.Array, k_size: int = 3) -> jax.Array:
    """Equivalent of F.conv2d(x, ones(C,1,k,k)/(k*k), padding=k//2, groups=C).

    x is NCHW (PyTorch layout); the kernel runs directly on NCHW (no HBM
    transposes).
    """
    N, C, H, W = x.shape
    k = int(k_size)
    if k < 1 or k % 2 == 0:
        # PyTorch's conv2d with padding=k//2 changes the spatial size for even
        # k; this kernel only implements the shape-preserving odd-k case.
        raise ValueError("mean_filter: k_size must be odd and >= 1")
    p = k // 2

    # Generation-aware VMEM budget (v5e/v6e: 128 MiB, v7x: 64 MiB per core).
    try:
        vmem_cap = int(pltpu.get_tpu_info().vmem_capacity_bytes)
    except Exception:
        vmem_cap = 64 * 1024 * 1024
    vmem_limit = min(vmem_cap // 2, 64 * 1024 * 1024)
    block_budget = vmem_limit // 4  # headroom for double-buffering + temporaries

    itemsize = jnp.dtype(x.dtype).itemsize
    # per channel: in + out blocks (x2 double-buffered each) + f32 padded
    # scratch + f32 W-pass accumulator value.
    per_channel = (H * W * itemsize * 4) + (H * (W + 2 * p) * 4) + (H * W * 4)
    cb = _pick_channel_tile(N, C, per_channel, block_budget)
    # TODO(synk): add an H-tile grid axis (with p-row halo) so a single channel
    # plane larger than the VMEM budget degrades gracefully instead of relying
    # on channel tiling alone.

    grid = (N, C // cb)
    kernel = functools.partial(_mean_filter_kernel, k=k, p=p, H=H, W=W)

    return pl.pallas_call(
        kernel,
        out_shape=jax.ShapeDtypeStruct((N, C, H, W), x.dtype),
        grid=grid,
        in_specs=[pl.BlockSpec((1, cb, H, W), lambda n, c: (n, c, 0, 0))],
        out_specs=pl.BlockSpec((1, cb, H, W), lambda n, c: (n, c, 0, 0)),
        scratch_shapes=[pltpu.VMEM((cb, H, W + 2 * p), jnp.float32)],
        compiler_params=pltpu.CompilerParams(
            dimension_semantics=("parallel", "parallel"),
            vmem_limit_bytes=int(vmem_limit),
        ),
    )(x)


if __name__ == "__main__":
    key = jax.random.PRNGKey(0)
    N, C, H, W = 2, 4, 16, 16
    k_size = 3
    x = jax.random.normal(key, (N, C, H, W), dtype=jnp.float32)

    y = jax.block_until_ready(mean_filter(x, k_size=k_size))

    # Pure-JAX reference: shifted-sum zero-padded box filter (== grouped conv2d
    # with a constant 1/(k*k) kernel and zero padding).
    p = k_size // 2
    xp = jnp.pad(x, ((0, 0), (0, 0), (p, p), (p, p)))
    ref = jnp.zeros_like(x)
    for di in range(k_size):
        for dj in range(k_size):
            ref = ref + xp[:, :, di:di + H, dj:dj + W]
    ref = ref / (k_size * k_size)

    assert y.shape == (N, C, H, W)
    assert jnp.allclose(y, ref, atol=1e-5, rtol=1e-5)
    print("KERNEL_OK")
</pallas_src>

<mosaic_0001>
module attributes {stable_mosaic.version = 11 : i64} {
  func.func @_mean_filter_kernel(%arg0: i32, %arg1: i32, %arg2: memref<1x4x16x16xf32, #tpu.memory_space<vmem>>, %arg3: memref<1x4x16x16xf32, #tpu.memory_space<vmem>>, %arg4: memref<4x16x18xf32, #tpu.memory_space<vmem>>) attributes {dimension_semantics = [#tpu.dimension_semantics<parallel>, #tpu.dimension_semantics<parallel>], iteration_bounds = array<i64: 2, 1>, scalar_prefetch = 0 : i64, scratch_operands = 1 : i64, tpu.core_type = #tpu.core_type<tc>, window_params = [{transform_indices = @transform_0, window_bounds = array<i64: 1, 4, 16, 16>}, {transform_indices = @transform_1, window_bounds = array<i64: 1, 4, 16, 16>}]} {
    %cst = arith.constant 0.000000e+00 : f32
    %0 = vector.broadcast %cst : f32 to vector<4x16x1xf32>
    %c0 = arith.constant 0 : index
    %c0_0 = arith.constant 0 : index
    %c0_1 = arith.constant 0 : index
    %1 = vector.load %arg4[%c0, %c0_0, %c0_1] : memref<4x16x18xf32, #tpu.memory_space<vmem>>, vector<4x16x1xf32>
    tpu.vector_store %arg4[%c0, %c0_0, %c0_1], %0 {strides = array<i32>} : memref<4x16x18xf32, #tpu.memory_space<vmem>>, vector<4x16x1xf32>,
    %c0_2 = arith.constant 0 : index
    %c0_3 = arith.constant 0 : index
    %c17 = arith.constant 17 : index
    %2 = vector.load %arg4[%c0_2, %c0_3, %c17] : memref<4x16x18xf32, #tpu.memory_space<vmem>>, vector<4x16x1xf32>
    tpu.vector_store %arg4[%c0_2, %c0_3, %c17], %0 {strides = array<i32>} : memref<4x16x18xf32, #tpu.memory_space<vmem>>, vector<4x16x1xf32>,
    %c0_4 = arith.constant 0 : index
    %c0_5 = arith.constant 0 : index
    %c0_6 = arith.constant 0 : index
    %c0_7 = arith.constant 0 : index
    %3 = vector.load %arg2[%c0_4, %c0_5, %c0_6, %c0_7] : memref<1x4x16x16xf32, #tpu.memory_space<vmem>>, vector<1x4x14x16xf32>
    %4 = vector.shape_cast %3 : vector<1x4x14x16xf32> to vector<4x14x16xf32>
    %c0_8 = arith.constant 0 : index
    %c0_9 = arith.constant 0 : index
    %c1 = arith.constant 1 : index
    %c0_10 = arith.constant 0 : index
    %5 = vector.load %arg2[%c0_8, %c0_9, %c1, %c0_10] : memref<1x4x16x16xf32, #tpu.memory_space<vmem>>, vector<1x4x14x16xf32>
    %6 = vector.shape_cast %5 : vector<1x4x14x16xf32> to vector<4x14x16xf32>
    %7 = arith.addf %4, %6 : vector<4x14x16xf32>
    %c0_11 = arith.constant 0 : index
    %c0_12 = arith.constant 0 : index
    %c2 = arith.constant 2 : index
    %c0_13 = arith.constant 0 : index
    %8 = vector.load %arg2[%c0_11, %c0_12, %c2, %c0_13] : memref<1x4x16x16xf32, #tpu.memory_space<vmem>>, vector<1x4x14x16xf32>
    %9 = vector.shape_cast %8 : vector<1x4x14x16xf32> to vector<4x14x16xf32>
    %10 = arith.addf %7, %9 : vector<4x14x16xf32>
    %c0_14 = arith.constant 0 : index
    %c1_15 = arith.constant 1 : index
    %c1_16 = arith.constant 1 : index
    %11 = vector.load %arg4[%c0_14, %c1_15, %c1_16] : memref<4x16x18xf32, #tpu.memory_space<vmem>>, vector<4x14x16xf32>
    tpu.vector_store %arg4[%c0_14, %c1_15, %c1_16], %10 {strides = array<i32>} : memref<4x16x18xf32, #tpu.memory_space<vmem>>, vector<4x14x16xf32>,
    %c0_17 = arith.constant 0 : index
    %c0_18 = arith.constant 0 : index
    %c0_19 = arith.constant 0 : index
    %c0_20 = arith.constant 0 : index
    %12 = vector.load %arg2[%c0_17, %c0_18, %c0_19, %c0_20] : memref<1x4x16x16xf32, #tpu.memory_space<vmem>>, vector<1x4x1x16xf32>
    %13 = vector.shape_cast %12 : vector<1x4x1x16xf32> to vector<4x1x16xf32>
    %c0_21 = arith.constant 0 : index
    %c0_22 = arith.constant 0 : index
    %c1_23 = arith.constant 1 : index
    %c0_24 = arith.constant 0 : index
    %14 = vector.load %arg2[%c0_21, %c0_22, %c1_23, %c0_24] : memref<1x4x16x16xf32, #tpu.memory_space<vmem>>, vector<1x4x1x16xf32>
    %15 = vector.shape_cast %14 : vector<1x4x1x16xf32> to vector<4x1x16xf32>
    %16 = arith.addf %13, %15 : vector<4x1x16xf32>
    %c0_25 = arith.constant 0 : index
    %c0_26 = arith.constant 0 : index
    %c1_27 = arith.constant 1 : index
    %17 = vector.load %arg4[%c0_25, %c0_26, %c1_27] : memref<4x16x18xf32, #tpu.memory_space<vmem>>, vector<4x1x16xf32>
    tpu.vector_store %arg4[%c0_25, %c0_26, %c1_27], %16 {strides = array<i32>} : memref<4x16x18xf32, #tpu.memory_space<vmem>>, vector<4x1x16xf32>,
    %c0_28 = arith.constant 0 : index
    %c0_29 = arith.constant 0 : index
    %c14 = arith.constant 14 : index
    %c0_30 = arith.constant 0 : index
    %18 = vector.load %arg2[%c0_28, %c0_29, %c14, %c0_30] : memref<1x4x16x16xf32, #tpu.memory_space<vmem>>, vector<1x4x1x16xf32>
    %19 = vector.shape_cast %18 : vector<1x4x1x16xf32> to vector<4x1x16xf32>
    %c0_31 = arith.constant 0 : index
    %c0_32 = arith.constant 0 : index
    %c15 = arith.constant 15 : index
    %c0_33 = arith.constant 0 : index
    %20 = vector.load %arg2[%c0_31, %c0_32, %c15, %c0_33] : memref<1x4x16x16xf32, #tpu.memory_space<vmem>>, vector<1x4x1x16xf32>
    %21 = vector.shape_cast %20 : vector<1x4x1x16xf32> to vector<4x1x16xf32>
    %22 = arith.addf %19, %21 : vector<4x1x16xf32>
    %c0_34 = arith.constant 0 : index
    %c15_35 = arith.constant 15 : index
    %c1_36 = arith.constant 1 : index
    %23 = vector.load %arg4[%c0_34, %c15_35, %c1_36] : memref<4x16x18xf32, #tpu.memory_space<vmem>>, vector<4x1x16xf32>
    tpu.vector_store %arg4[%c0_34, %c15_35, %c1_36], %22 {strides = array<i32>} : memref<4x16x18xf32, #tpu.memory_space<vmem>>, vector<4x1x16xf32>,
    %c0_37 = arith.constant 0 : index
    %c0_38 = arith.constant 0 : index
    %c0_39 = arith.constant 0 : index
    %24 = vector.load %arg4[%c0_37, %c0_38, %c0_39] : memref<4x16x18xf32, #tpu.memory_space<vmem>>, vector<4x16x16xf32>
    %c0_40 = arith.constant 0 : index
    %c0_41 = arith.constant 0 : index
    %c1_42 = arith.constant 1 : index
    %25 = vector.load %arg4[%c0_40, %c0_41, %c1_42] : memref<4x16x18xf32, #tpu.memory_space<vmem>>, vector<4x16x16xf32>
    %26 = arith.addf %24, %25 : vector<4x16x16xf32>
    %c0_43 = arith.constant 0 : index
    %c0_44 = arith.constant 0 : index
    %c2_45 = arith.constant 2 : index
    %27 = vector.load %arg4[%c0_43, %c0_44, %c2_45] : memref<4x16x18xf32, #tpu.memory_space<vmem>>, vector<4x16x16xf32>
    %28 = arith.addf %26, %27 : vector<4x16x16xf32>
    %cst_46 = arith.constant 0.111111112 : f32
    %29 = vector.broadcast %cst_46 : f32 to vector<4x16x16xf32>
    %30 = arith.mulf %28, %29 : vector<4x16x16xf32>
    %c0_47 = arith.constant 0 : index
    %c0_48 = arith.constant 0 : index
    %c0_49 = arith.constant 0 : index
    %c0_50 = arith.constant 0 : index
    %31 = vector.load %arg3[%c0_47, %c0_48, %c0_49, %c0_50] : memref<1x4x16x16xf32, #tpu.memory_space<vmem>>, vector<1x4x16x16xf32>
    %32 = vector.shape_cast %31 : vector<1x4x16x16xf32> to vector<4x16x16xf32>
    %33 = vector.shape_cast %30 : vector<4x16x16xf32> to vector<1x4x16x16xf32>
    tpu.vector_store %arg3[%c0_47, %c0_48, %c0_49, %c0_50], %33 {strides = array<i32>} : memref<1x4x16x16xf32, #tpu.memory_space<vmem>>, vector<1x4x16x16xf32>,
    return
  }
  func.func @transform_0(%arg0: i32, %arg1: i32) -> (i32, i32, i32, i32) {
    %c0_i32 = arith.constant 0 : i32
    %c0_i32_0 = arith.constant 0 : i32
    %c0_i32_1 = arith.constant 0 : i32
    return %arg0, %arg1, %c0_i32, %c0_i32_0 : i32, i32, i32, i32
  }
  func.func @transform_1(%arg0: i32, %arg1: i32) -> (i32, i32, i32, i32) {
    %c0_i32 = arith.constant 0 : i32
    %c0_i32_0 = arith.constant 0 : i32
    %c0_i32_1 = arith.constant 0 : i32
    return %arg0, %arg1, %c0_i32, %c0_i32_0 : i32, i32, i32, i32
  }
}

</mosaic_0001>

<bundles_post_ra>
// kernel: tpu_custom_call.1
= control target key start
LH: loop header
LB: loop body
LE: loop exit
PB: predicated region body
PF: predicated region fallthrough
CT: control target
= control target key end

     0   :  { %6 = vsyncpa [#allocation4], 0  ;;  %s1019_s0 = inlined_call_operand.hbm [shape: f32[2,4,16,16], index: 0, kind: input, shape index: {}]   ;;  %s1020_s1 = inlined_call_operand.hbm [shape: f32[2,4,16,16], index: 1, kind: output, shape index: {}]  }
   0x1   :  { %8 = vsyncpa [#allocation4 + $0x1], 0 }
   0x2   :  { %9 = vsyncpa [#allocation5], 0 }
   0x3   :  { %11 = vsyncpa [#allocation5 + $0x1], 0  ;;  %s743_s6 = smov 0   ;;  %s745_s7 = smov 0  }
   0x4   :  { %s747_s8 = smov 0   ;;  %s749_s9 = smov 0  }
   0x5   :  { %s751_s10 = smov 0   ;;  %s753_s11 = smov 0  }
   0x6 LB: > { %s522_s12 = sadd.s32 4294967295, %s721_s11   ;;  %s523_s13 = sadd.s32 4294967294, %s721_s11   ;;  %s721_s11 = sphi %s753_s11, %s17_s11   ;;  %s717_s10 = sphi %s751_s10, %s1035_s10   ;;  %s713_s9 = sphi %s749_s9, %s1034_s9   ;;  %s709_s8 = sphi %s747_s8, %s1033_s8   ;;  %s705_s7 = sphi %s745_s7, %s1032_s7   ;;  %s701_s6 = sphi %s743_s6, %s1031_s6  }
   0x7   : > { %s29_s14 = sadd.s32 1, %s717_s10  ;;  %s38_s15 = sadd.s32 1, %s709_s8 }
   0x8   : > { %p31_p0 = scmp.ge.s32.totalorder %s29_s14, 2  ;;  %p45_p1 = scmp.ne.s32.totalorder %s709_s8, %s705_s7 }
   0x9   : > { %p46_p2 = scmp.eq.s32.totalorder %s721_s11, 0  ;;  %p51_p3 = scmp.ne.s32.totalorder %s705_s7, %s701_s6 }
   0xa   : > { %s1037_s14 = smov (%p31_p0, %s29_s14), 0  ;;  %p52_p5 = scmp.eq.s32.totalorder %s522_s12, 0 }
   0xb   : > { %p784_p4 = por %p46_p2, %p45_p1  ;;  %s33_s17 = ssub.s32 %s717_s10, %s1037_s14 }
   0xc   : > { %p77_p6 = scmp.eq.s32.totalorder %s522_s12, 1  ;;  %p36_p7 = scmp.eq.s32.totalorder %s33_s17, 0 }
   0xd   : > { %p790_p8 = por %p52_p5, %p51_p3  ;;  %p83_p10 = scmp.eq.s32.totalorder %s523_s13, 1 }
   0xe   : > { %p794_p9 = por %p77_p6, %p45_p1  ;;  %p551_p13 = scmp.lt.s32.totalorder %s721_s11, 2 }
   0xf   : > { %s799_s20 = scalar_select %p36_p7, %s709_s8, %s38_s15  }
  0x10   : > { %s1024_s19 = scalar_select %p794_p9, 1, 0 }
  0x11   : > { %p801_p11 = por %p83_p10, %p51_p3  ;;  %s103_s22 = sand.u32 1, %s709_s8  }
  0x12   : > { %s526_s23 = sshll.u32 %s103_s22, 6  ;;  %s537_s24 = sshll.u32 %s717_s10, 10 }
  0x13   : > { %s1025_s21 = scalar_select %p801_p11, 1, 0 }
  0x14   : > { %s812_s27 = scalar_lea.hbm %s1019_s0, %s537_s24  ;;  %s107_s28 = scalar_lea.vmem [#allocation3], %s526_s23 }
  0x15   : > { %s117_s29 = sshll.u32 %s107_s28, 4  ;;  %p818_p0 = pnand %p551_p13, %p784_p4  ;;  %s814_s29 = int_to_ptr.vmem [resolvable:$true] %s117_s29 }
  0x16   : > { %s823_s2 = scalar_lea.sflag [#allocation4], %s103_s22  ;;  %s609_s3 = scalar_lea.hbm %s812_s27, 1024 }
  0x17   : > { %p610_p2 = scmp.ne.s32.totalorder %s812_s27, %s609_s3  ;;  %p611_p3 = pneg %p818_p0 }
  0x18   : > { %s614_s12 = scalar_lea.hbm %s1019_s0, 2048  ;;  %p615_p4 = scmp.lt.u32.totalorder %s812_s27, %s1019_s0 }
  0x19   : > { %p612_p5 = pnand %p611_p3, %p610_p2  ;;  %p616_p7 = scmp.lt.u32.totalorder %s614_s12, %s609_s3 }
  0x1a   : > { %p618_p13 = scmp.lt.u32.totalorder %s609_s3, %s812_s27 }
  0x1b   : > { %p613_p6 = pneg %p612_p5  ;;  %p617_p10 = por %p616_p7, %p615_p4 }
  0x1d   : > { %p619_p12 = por %p618_p13, %p617_p10 }
  0x1f   : > { %p620_p1 = pnand %p619_p12, %p613_p6 }
  0x21   : > { %623 = shalt.err (!%p620_p1)
}
  0x22   : > { %s624_s16 = scalar_lea.vmem %s814_s29, 1024  ;;  %s723_s17 = smov [#allocation3]  }
  0x23   : > { %p625_p2 = scmp.ne.s32.totalorder %s814_s29, %s624_s16  ;;  %s629_s22 = sshll.u32 %s723_s17, 4  ;;  %s630_s22 = int_to_ptr.vmem [resolvable:$false] %s629_s22 }
  0x24   : > { %s631_s23 = scalar_lea.vmem %s630_s22, 2048  ;;  %p632_p9 = scmp.lt.s32.totalorder %s814_s29, %s630_s22 }
  0x25   : > { %p627_p5 = pnand %p625_p2, %p611_p3  ;;  %p633_p4 = scmp.lt.s32.totalorder %s631_s23, %s624_s16 }
  0x27   : > { %p628_p11 = pneg %p627_p5  ;;  %p634_p7 = por %p633_p4, %p632_p9 }
  0x29   : > { %p635_p10 = pnand %p634_p7, %p628_p11 }
  0x2b   : > { %638 = shalt.err (!%p635_p10)
}
  0x2c   : > { %s724_s24 = smov 128   ;;  %s725_s25 = smov 8  }
  0x2d   : > { %546 = dma.hbm_to_vmem [thread:$0]  (!%p818_p0), %s812_s27, 1024, %s814_s29, %s823_s2, %s724_s24, %s724_s24, %s725_s25  }
  0x2e   : > { %p125_p12 = scmp.lt.s32.totalorder %s721_s11, 3  ;;  %p1027_p1 = scmp.ge.s32.totalorder %s721_s11, 1 }
  0x30   : > { %p126_p3 = pnand %p1027_p1, %p125_p12 }
  0x31   : > { %s855_s26 = sand.u32 (!%p126_p3), 1, %s705_s7  }
  0x32   : > { %129 = sbr.rel (%p126_p3) target bundleno = 373 (0x175), region = 24  ;;  %s530_s28 = sshll.u32 (!%p126_p3), %s855_s26, 6 }
  0x33   : > { %s132_s3 = scalar_lea.sflag (!%p126_p3), [#allocation4], %s855_s26  ;;  %s861_s4 = scalar_lea.vmem (!%p126_p3), [#allocation3], %s530_s28 }
  0x39   : > { %692 = dma.done.wait (%p790_p8), %s132_s3, 1024  }
  0x3a   : > { %694 = vsyncadd (%p790_p8), %s132_s3, 4294966272  ;;  %vm156_vm0 = vcmask 7168   ;;  %vm165_vm1 = vcmask 146568   ;;  %v726_v0 = vmov 0.0   ;;  %v176_v1 = vld [vmem:[%s861_s4 + $0x10] sm:$0xff]  ;;  %v174_v5 = vld [vmem:[%s861_s4] sm:$0xff] }
  0x3b   : > { %159 = vst.msk [vmem:[#allocation2 + $0x10] sm:$0xff] %vm156_vm0, %v726_v0  ;;  %160 = vst.msk [vmem:[#allocation2 + $0x18] sm:$0xff] %vm156_vm0, %v726_v0  ;;  %v184_v2 = vld [vmem:[%s861_s4 + $0x11] sm:$0xff]  ;;  %v182_v6 = vld [vmem:[%s861_s4 + $0x1] sm:$0xff]  ;;  %s727_s18 = smov 1   ;;  %vm246_vm2 = vcmask 138248  }
  0x3c   : > { %157 = vst.msk [vmem:[#allocation2] sm:$0xff] %vm156_vm0, %v726_v0  ;;  %158 = vst.msk [vmem:[#allocation2 + $0x8] sm:$0xff] %vm156_vm0, %v726_v0  ;;  %v200_v3 = vld [vmem:[%s861_s4 + $0x12] sm:$0xff]  ;;  %v192_v4 = vadd.f32 %v184_v2, %v176_v1  ;;  %v198_v7 = vld [vmem:[%s861_s4 + $0x2] sm:$0xff]  ;;  %v190_v8 = vadd.f32 %v182_v6, %v174_v5  ;;  %vm248_vm3 = vcmask 136200   ;;  %vm284_vm4 = vcmask 131080  }
  0x3d   : > { %161 = vst.msk [vmem:[#allocation2 + $0x20] sm:$0xff] %vm156_vm0, %v726_v0  ;;  %162 = vst.msk [vmem:[#allocation2 + $0x28] sm:$0xff] %vm156_vm0, %v726_v0  ;;  %v177_v9 = vld [vmem:[%s861_s4 + $0x18] sm:$0x3f]  ;;  %v175_v14 = vld [vmem:[%s861_s4 + $0x8] sm:$0x3f] }
  0x3e   : > { %163 = vst.msk [vmem:[#allocation2 + $0x30] sm:$0xff] %vm156_vm0, %v726_v0  ;;  %164 = vst.msk [vmem:[#allocation2 + $0x38] sm:$0xff] %vm156_vm0, %v726_v0  ;;  %v185_v10 = vld [vmem:[%s861_s4 + $0x19] sm:$0x3f]  ;;  %v208_v12 = vadd.f32 %v200_v3, %v192_v4  ;;  %v183_v15 = vld [vmem:[%s861_s4 + $0x9] sm:$0x3f]  ;;  %v206_v17 = vadd.f32 %v198_v7, %v190_v8 }
  0x3f   : > { %168 = vst.msk [vmem:[#allocation2 + $0x10] sm:$0xff] %vm165_vm1, %v726_v0  ;;  %169 = vst.msk [vmem:[#allocation2 + $0x18] sm:$0xff] %vm165_vm1, %v726_v0  ;;  %v201_v11 = vld [vmem:[%s861_s4 + $0x1a] sm:$0x3f]  ;;  %v193_v13 = vadd.f32 %v185_v10, %v177_v9  ;;  %v199_v16 = vld [vmem:[%s861_s4 + $0xa] sm:$0x3f]  ;;  %v191_v18 = vadd.f32 %v183_v15, %v175_v14 }
  0x40   : > { %166 = vst.msk [vmem:[#allocation2] sm:$0xff] %vm165_vm1, %v726_v0  ;;  %167 = vst.msk [vmem:[#allocation2 + $0x8] sm:$0xff] %vm165_vm1, %v726_v0  ;;  %v179_v19 = vld [vmem:[%s861_s4 + $0x28] sm:$0x3f]  ;;  %226 = vrot.lane.b32.xlu1 %v208_v12, %s727_s18  ;;  %v178_v23 = vld [vmem:[%s861_s4 + $0x20] sm:$0xff]  ;;  %222 = vrot.lane.b32.xlu0 %v206_v17, %s727_s18  ;;  %s728_s27 = smov 127  }
  0x41   : > { %170 = vst.msk [vmem:[#allocation2 + $0x20] sm:$0xff] %vm165_vm1, %v726_v0  ;;  %171 = vst.msk [vmem:[#allocation2 + $0x28] sm:$0xff] %vm165_vm1, %v726_v0  ;;  %v187_v20 = vld [vmem:[%s861_s4 + $0x29] sm:$0x3f]  ;;  %v209_v21 = vadd.f32 %v201_v11, %v193_v13  ;;  %v186_v24 = vld [vmem:[%s861_s4 + $0x21] sm:$0xff]  ;;  %v207_v25 = vadd.f32 %v199_v16, %v191_v18  ;;  %s729_s29 = smov 126  }
  0x42   : > { %172 = vst.msk [vmem:[#allocation2 + $0x30] sm:$0xff] %vm165_vm1, %v726_v0  ;;  %173 = vst.msk [vmem:[#allocation2 + $0x38] sm:$0xff] %vm165_vm1, %v726_v0  ;;  %v195_v22 = vadd.f32 %v187_v20, %v179_v19  ;;  %v203_v26 = vld [vmem:[%s861_s4 + $0x2a] sm:$0x3f]  ;;  %v194_v27 = vadd.f32 %v186_v24, %v178_v23  ;;  %v181_v28 = vld [vmem:[%s861_s4 + $0x38] sm:$0x3f] }
  0x43   : > { %v189_v29 = vld [vmem:[%s861_s4 + $0x39] sm:$0x3f]  ;;  %v202_v30 = vld [vmem:[%s861_s4 + $0x22] sm:$0xff]  ;;  %v180_v31 = vld [vmem:[%s861_s4 + $0x30] sm:$0xff]  ;;  %vm409_vm5 = vcmask 130048   ;;  %s945_s30 = scalar_lea.vmem [#allocation6], %s530_s28 }
  0x44   : > { %v188_v32 = vld [vmem:[%s861_s4 + $0x31] sm:$0xff]  ;;  %228 = vrot.lane.b32.xlu1 %v209_v21, %s727_s18  ;;  %v211_v33 = vadd.f32 %v203_v26, %v195_v22  ;;  %v197_v34 = vadd.f32 %v189_v29, %v181_v28  ;;  %224 = vrot.lane.b32.xlu0 %v207_v25, %s727_s18  ;;  %v210_v35 = vadd.f32 %v202_v30, %v194_v27  ;;  %v205_v36 = vld [vmem:[%s861_s4 + $0x3a] sm:$0x3f]  ;;  %s538_s2 = sshll.u32 %s713_s9, 10  ;;  %s435_s5 = sshll.u32 %s945_s30, 4  ;;  %s968_s5 = int_to_ptr.vmem [resolvable:$true] %s435_s5 }
  0x45   : > { %v196_v37 = vadd.f32 %v188_v32, %v180_v31  ;;  %v204_v38 = vld [vmem:[%s861_s4 + $0x32] sm:$0xff]  ;;  %v257_v41 = vld [vmem:[%s861_s4 + $0x10] sm:$0x1]  ;;  %v261_v42 = vld [vmem:[%s861_s4 + $0x11] sm:$0x1]  ;;  %s966_s15 = scalar_lea.hbm %s1020_s1, %s538_s2  ;;  %s419_s16 = scalar_lea.sflag [#allocation5], %s855_s26 }
  0x46   : > { %v213_v39 = vadd.f32 %v205_v36, %v197_v34  ;;  %v256_v43 = vld [vmem:[%s861_s4] sm:$0x1]  ;;  %v260_v44 = vld [vmem:[%s861_s4 + $0x1] sm:$0x1]  ;;  %v265_v45 = vadd.f32 %v261_v42, %v257_v41  ;;  %v259_v47 = vld [vmem:[%s861_s4 + $0x30] sm:$0x1] }
  0x47   : > { %v212_v40 = vadd.f32 %v204_v38, %v196_v37  ;;  %v264_v46 = vadd.f32 %v260_v44, %v256_v43  ;;  %v263_v48 = vld [vmem:[%s861_s4 + $0x31] sm:$0x1]  ;;  %v258_v49 = vld [vmem:[%s861_s4 + $0x20] sm:$0x1]  ;;  %v262_v50 = vld [vmem:[%s861_s4 + $0x21] sm:$0x1] }
  0x48   : > { %232 = vrot.lane.b32.xlu1 %v211_v33, %s727_s18  ;;  %230 = vrot.lane.b32.xlu0 %v210_v35, %s727_s18  ;;  %v267_v51 = vadd.f32 %v263_v48, %v259_v47  ;;  %v266_v52 = vadd.f32 %v262_v50, %v258_v49  ;;  %v290_v53 = vld [vmem:[%s861_s4 + $0x1e] sm:$0x1]  ;;  %v294_v54 = vld [vmem:[%s861_s4 + $0x1f] sm:$0x1]  ;;  %s639_s9 = scalar_lea.vmem %s968_s5, 1024  ;;  %p1028_p9 = scmp.ne.s32.totalorder %s1024_s19, 0 }
  0x49   : > { %v289_v55 = vld [vmem:[%s861_s4 + $0xe] sm:$0x1]  ;;  %v293_v56 = vld [vmem:[%s861_s4 + $0xf] sm:$0x1]  ;;  %v298_v57 = vadd.f32 %v294_v54, %v290_v53  ;;  %v292_v59 = vld [vmem:[%s861_s4 + $0x3e] sm:$0x1]  ;;  %p640_p8 = scmp.ne.s32.totalorder %s968_s5, %s639_s9 }
  0x4a   : > { %v297_v58 = vadd.f32 %v293_v56, %v289_v55  ;;  %v296_v60 = vld [vmem:[%s861_s4 + $0x3f] sm:$0x1]  ;;  %v291_v61 = vld [vmem:[%s861_s4 + $0x2e] sm:$0x1]  ;;  %v295_v62 = vld [vmem:[%s861_s4 + $0x2f] sm:$0x1] }
  0x4b   : > { %v300_v63 = vadd.f32 %v296_v60, %v292_v59  ;;  %v299_v0 = vadd.f32 %v295_v62, %v291_v61  ;;  %p641_p11 = pnand %p640_p8, %p1028_p9  ;;  %s730_s17 = smov [#allocation6]  }
  0x4c   : > { %236 = vrot.lane.b32.xlu1 %v213_v39, %s727_s18  ;;  %234 = vrot.lane.b32.xlu0 %v212_v40, %s727_s18  ;;  %s643_s22 = sshll.u32 %s730_s17, 4  ;;  %s644_s22 = int_to_ptr.vmem [resolvable:$false] %s643_s22 }
  0x4d   : > { %p642_p0 = pneg %p641_p11  ;;  %s645_s23 = scalar_lea.vmem %s644_s22, 2048 }
  0x4e   : > { %p646_p6 = scmp.lt.s32.totalorder %s968_s5, %s644_s22  ;;  %p647_p13 = scmp.lt.s32.totalorder %s645_s23, %s639_s9 }
  0x50   : > { %274 = vrot.lane.b32.xlu1 %v265_v45, %s727_s18  ;;  %272 = vrot.lane.b32.xlu0 %v264_v46, %s727_s18  ;;  %p648_p2 = por %p647_p13, %p646_p6 }
  0x52   : > { %p649_p5 = pnand %p648_p2, %p642_p0 }
  0x54   : > { %278 = vrot.lane.b32.xlu1 %v267_v51, %s727_s18  ;;  %276 = vrot.lane.b32.xlu0 %v266_v52, %s727_s18 }
  0x58   : > { %307 = vrot.lane.b32.xlu1 %v298_v57, %s727_s18  ;;  %305 = vrot.lane.b32.xlu0 %v297_v58, %s727_s18 }
  0x5c   : > { %311 = vrot.lane.b32.xlu1 %v300_v63, %s727_s18  ;;  %309 = vrot.lane.b32.xlu0 %v299_v0, %s727_s18 }
  0xb2   : > { %v227_v1 = vpop.permute.xlu1 %226  ;;  %v223_v2 = vpop.permute.xlu0 %222 }
  0xb3   : > { %250 = vst.msk [vmem:[#allocation2 + $0x11] sm:$0xff] %vm246_vm2, %v227_v1  ;;  %247 = vst.msk [vmem:[#allocation2 + $0x1] sm:$0xff] %vm246_vm2, %v223_v2 }
  0xb6   : > { %v229_v3 = vpop.permute.xlu1 %228  ;;  %v225_v4 = vpop.permute.xlu0 %224 }
  0xb7   : > { %251 = vst.msk [vmem:[#allocation2 + $0x19] sm:$0x3f] %vm248_vm3, %v229_v3  ;;  %249 = vst.msk [vmem:[#allocation2 + $0x9] sm:$0x3f] %vm248_vm3, %v225_v4 }
  0xba   : > { %v233_v5 = vpop.permute.xlu1 %232  ;;  %v231_v6 = vpop.permute.xlu0 %230 }
  0xbb   : > { %253 = vst.msk [vmem:[#allocation2 + $0x29] sm:$0x3f] %vm248_vm3, %v233_v5 }
  0xbc   : > { %252 = vst.msk [vmem:[#allocation2 + $0x21] sm:$0xff] %vm246_vm2, %v231_v6 }
  0xbe   : > { %v237_v7 = vpop.permute.xlu1 %236  ;;  %v235_v8 = vpop.permute.xlu0 %234 }
  0xbf   : > { %255 = vst.msk [vmem:[#allocation2 + $0x39] sm:$0x3f] %vm248_vm3, %v237_v7 }
  0xc0   : > { %254 = vst.msk [vmem:[#allocation2 + $0x31] sm:$0xff] %vm246_vm2, %v235_v8 }
  0xc2   : > { %v275_v9 = vpop.permute.xlu1 %274  ;;  %v273_v10 = vpop.permute.xlu0 %272 }
  0xc3   : > { %286 = vst.msk [vmem:[#allocation2 + $0x10] sm:$0x1] %vm284_vm4, %v275_v9  ;;  %285 = vst.msk [vmem:[#allocation2] sm:$0x1] %vm284_vm4, %v273_v10 }
  0xc6   : > { %v279_v11 = vpop.permute.xlu1 %278  ;;  %v277_v12 = vpop.permute.xlu0 %276 }
  0xc7   : > { %288 = vst.msk [vmem:[#allocation2 + $0x30] sm:$0x1] %vm284_vm4, %v279_v11  ;;  %287 = vst.msk [vmem:[#allocation2 + $0x20] sm:$0x1] %vm284_vm4, %v277_v12 }
  0xca   : > { %v308_v13 = vpop.permute.xlu1 %307  ;;  %v306_v14 = vpop.permute.xlu0 %305  ;;  %v321_v15 = vld [vmem:[#allocation2] sm:$0xff]  ;;  %v323_v18 = vld [vmem:[#allocation2 + $0x10] sm:$0xff] }
  0xcb   : > { %318 = vst.msk [vmem:[#allocation2 + $0x1f] sm:$0x1] %vm284_vm4, %v308_v13  ;;  %317 = vst.msk [vmem:[#allocation2 + $0xf] sm:$0x1] %vm284_vm4, %v306_v14  ;;  %337 = vrot.lane.b32.xlu0 %v321_v15, %s728_s27 }
  0xce   : > { %v312_v16 = vpop.permute.xlu1 %311  ;;  %v310_v17 = vpop.permute.xlu0 %309  ;;  %v325_v20 = vld [vmem:[#allocation2 + $0x20] sm:$0xff]  ;;  %v327_v22 = vld [vmem:[#allocation2 + $0x30] sm:$0xff] }
  0xcf   : > { %320 = vst.msk [vmem:[#allocation2 + $0x3f] sm:$0x1] %vm284_vm4, %v312_v16  ;;  %319 = vst.msk [vmem:[#allocation2 + $0x2f] sm:$0x1] %vm284_vm4, %v310_v17  ;;  %341 = vrot.lane.b32.xlu0 %v323_v18, %s728_s27 }
  0xd2   : > { %v322_v19 = vld [vmem:[#allocation2 + $0x8] sm:$0xff]  ;;  %v324_v21 = vld [vmem:[#allocation2 + $0x18] sm:$0xff] }
  0xd3   : > { %339 = vrot.lane.b32.xlu1 %v322_v19, %s728_s27  ;;  %345 = vrot.lane.b32.xlu0 %v325_v20, %s728_s27 }
  0xd6   : > { %v326_v23 = vld [vmem:[#allocation2 + $0x28] sm:$0xff]  ;;  %v328_v24 = vld [vmem:[#allocation2 + $0x38] sm:$0xff] }
  0xd7   : > { %343 = vrot.lane.b32.xlu1 %v324_v21, %s728_s27  ;;  %349 = vrot.lane.b32.xlu0 %v327_v22, %s728_s27 }
  0xdb   : > { %347 = vrot.lane.b32.xlu1 %v326_v23, %s728_s27  ;;  %369 = vrot.lane.b32.xlu0 %v321_v15, %s729_s29 }
  0xdf   : > { %351 = vrot.lane.b32.xlu1 %v328_v24, %s728_s27  ;;  %373 = vrot.lane.b32.xlu0 %v323_v18, %s729_s29 }
  0xe3   : > { %371 = vrot.lane.b32.xlu1 %v322_v19, %s729_s29  ;;  %377 = vrot.lane.b32.xlu0 %v325_v20, %s729_s29 }
  0xe7   : > { %375 = vrot.lane.b32.xlu1 %v324_v21, %s729_s29  ;;  %381 = vrot.lane.b32.xlu0 %v327_v22, %s729_s29 }
  0xeb   : > { %379 = vrot.lane.b32.xlu1 %v326_v23, %s729_s29 }
  0xef   : > { %383 = vrot.lane.b32.xlu1 %v328_v24, %s729_s29 }
 0x13d   : > { %v338_v25 = vpop.permute.xlu0 %337 }
 0x13e   : > { %v361_v31 = vadd.f32 %v338_v25, %v321_v15 }
 0x141   : > { %v342_v26 = vpop.permute.xlu0 %341 }
 0x142   : > { %v363_v35 = vadd.f32 %v342_v26, %v323_v18 }
 0x145   : > { %v340_v27 = vpop.permute.xlu1 %339  ;;  %v346_v28 = vpop.permute.xlu0 %345 }
 0x146   : > { %v362_v40 = vadd.f32 %v340_v27, %v322_v19  ;;  %v365_v41 = vadd.f32 %v346_v28, %v325_v20 }
 0x149   : > { %v344_v29 = vpop.permute.xlu1 %343  ;;  %v350_v30 = vpop.permute.xlu0 %349 }
 0x14a   : > { %v364_v47 = vadd.f32 %v344_v29, %v324_v21  ;;  %v367_v48 = vadd.f32 %v350_v30, %v327_v22 }
 0x14d   : > { %v348_v32 = vpop.permute.xlu1 %347  ;;  %v370_v33 = vpop.permute.xlu0 %369 }
 0x14e   : > { %v393_v34 = vadd.f32 %v370_v33, %v361_v31  ;;  %v366_v55 = vadd.f32 %v348_v32, %v326_v23 }
 0x150   : > { %v401_v36 = vmul.f32 0.11111111, %v393_v34 }
 0x151   : > { %v352_v37 = vpop.permute.xlu1 %351  ;;  %v374_v38 = vpop.permute.xlu0 %373 }
 0x152   : > { %410 = vst.msk [vmem:[%s945_s30] sm:$0xff] %vm409_vm5, %v401_v36  ;;  %v395_v39 = vadd.f32 %v374_v38, %v363_v35  ;;  %v368_v60 = vadd.f32 %v352_v37, %v328_v24 }
 0x154   : > { %v403_v42 = vmul.f32 0.11111111, %v395_v39 }
 0x155   : > { %v372_v43 = vpop.permute.xlu1 %371  ;;  %v378_v44 = vpop.permute.xlu0 %377 }
 0x156   : > { %412 = vst.msk [vmem:[%s945_s30 + $0x10] sm:$0xff] %vm409_vm5, %v403_v42  ;;  %v394_v45 = vadd.f32 %v372_v43, %v362_v40  ;;  %v397_v46 = vadd.f32 %v378_v44, %v365_v41 }
 0x158   : > { %v402_v49 = vmul.f32 0.11111111, %v394_v45  ;;  %v405_v50 = vmul.f32 0.11111111, %v397_v46 }
 0x159   : > { %v376_v51 = vpop.permute.xlu1 %375  ;;  %v382_v52 = vpop.permute.xlu0 %381 }
 0x15a   : > { %411 = vst.msk [vmem:[%s945_s30 + $0x8] sm:$0xff] %vm409_vm5, %v402_v49  ;;  %414 = vst.msk [vmem:[%s945_s30 + $0x20] sm:$0xff] %vm409_vm5, %v405_v50  ;;  %v396_v53 = vadd.f32 %v376_v51, %v364_v47  ;;  %v399_v54 = vadd.f32 %v382_v52, %v367_v48 }
 0x15c   : > { %v404_v56 = vmul.f32 0.11111111, %v396_v53  ;;  %v407_v57 = vmul.f32 0.11111111, %v399_v54 }
 0x15d   : > { %v380_v58 = vpop.permute.xlu1 %379 }
 0x15e   : > { %413 = vst.msk [vmem:[%s945_s30 + $0x18] sm:$0xff] %vm409_vm5, %v404_v56  ;;  %416 = vst.msk [vmem:[%s945_s30 + $0x30] sm:$0xff] %vm409_vm5, %v407_v57  ;;  %v398_v59 = vadd.f32 %v380_v58, %v366_v55 }
 0x160   : > { %v406_v61 = vmul.f32 0.11111111, %v398_v59 }
 0x161   : > { %v384_v62 = vpop.permute.xlu1 %383 }
 0x162   : > { %415 = vst.msk [vmem:[%s945_s30 + $0x28] sm:$0xff] %vm409_vm5, %v406_v61  ;;  %v400_v63 = vadd.f32 %v384_v62, %v368_v60 }
 0x164   : > { %v408_v0 = vmul.f32 0.11111111, %v400_v63 }
 0x166   : > { %417 = vst.msk [vmem:[%s945_s30 + $0x38] sm:$0xff] %vm409_vm5, %v408_v0 }
 0x167   : > { %652 = shalt.err (!%p649_p5)
}
 0x168   : > { %s653_s24 = scalar_lea.hbm %s966_s15, 1024  ;;  %s657_s3 = scalar_lea.hbm %s1020_s1, 2048 }
 0x169   : > { %p654_p4 = scmp.ne.s32.totalorder %s966_s15, %s653_s24  ;;  %p658_p12 = scmp.lt.u32.totalorder %s966_s15, %s1020_s1 }
 0x16a   : > { %p659_p1 = scmp.lt.u32.totalorder %s657_s3, %s653_s24  ;;  %p661_p8 = scmp.lt.u32.totalorder %s653_s24, %s966_s15 }
 0x16b   : > { %p655_p7 = pnand %p654_p4, %p1028_p9 }
 0x16c   : > { %p660_p3 = por %p659_p1, %p658_p12 }
 0x16d   : > { %p656_p10 = pneg %p655_p7 }
 0x16e   : > { %p662_p11 = por %p661_p8, %p660_p3 }
 0x170   : > { %p663_p0 = pnand %p662_p11, %p656_p10 }
 0x172   : > { %666 = shalt.err (!%p663_p0)
}
 0x173   : > { %s731_s27 = smov 128   ;;  %s732_s29 = smov 8  }
 0x174   : > { %541 = dma.vmem_to_hbm [thread:$0]  (%p1028_p9), %s968_s5, 1024, %s966_s15, %s419_s16, %s731_s27, %s731_s27, %s732_s29  }
 0x175 PF: > { %s450_s30 = sand.u32 1, %s701_s6   ;;  %p1029_p6 = scmp.ne.s32.totalorder %s1025_s21, 0 }
 0x176   : > { %p1030_p13 = scmp.ge.s32.totalorder %s721_s11, 2  ;;  %s451_s2 = scalar_lea.sflag [#allocation5], %s450_s30 }
 0x178   : > { %p548_p2 = pnand %p1030_p13, %p1029_p6 }
 0x17a   : > { %696 = dma.done.wait (!%p548_p2), %s451_s2, 1024  }
 0x17b   : > { %698 = vsyncadd (!%p548_p2), %s451_s2, 4294966272  ;;  %s17_s11 = sadd.s32 1, %s721_s11   ;;  %s1031_s6 = smov %s705_s7 }
 0x17c   : > { %p14_p5 = scmp.ge.s32.totalorder %s17_s11, 4   ;;  %s1032_s7 = smov %s709_s8 }
 0x17d   : > { %s1033_s8 = smov %s799_s20  ;;  %s1034_s9 = smov %s717_s10 }
 0x17e   : > { %s1035_s10 = smov %s1037_s14  ;;  %16 = sbr.rel (!%p14_p5) target bundleno = 6 (0x6), region = 69 }
 0x185   :  { %456 = vsyncpa [#allocation4], 1 }
 0x186   :  { %458 = vsyncpa [#allocation4 + $0x1], 1 }
 0x187   :  { %459 = vsyncpa [#allocation5], 1 }
 0x188   :  { %461 = vsyncpa [#allocation5 + $0x1], 1 }

</bundles_post_ra>
